<compile_context>
chip_gen: v5e
topology: v5e:2x2
jax: 0.10.0
libtpu: 0.0.40
codegen_flags: <defaults>
</compile_context>

<pallas_src>
import functools

import numpy as np

import jax
import jax.numpy as jnp
from jax import lax
from jax.experimental import pallas as pl
from jax.experimental.pallas import tpu as pltpu

EPS = 1e-5


# ----------------------------------------------------------------------------------
# Kernel factory: fused convlow + coordinate attention + identity add for B_TILE
# images per grid step.  All planes are (C, h*w) with h*w on the lane axis.
# ----------------------------------------------------------------------------------
def _make_kernel(b_tile, h, w, mip, oup):
    bf16 = jnp.bfloat16

    def kernel(x_ref, p_ref, pool_ref, r_ref, wsq_ref, whw_ref, w3_ref, bias_ref,
               out_ref):
        # Per-step constants (shared by all images in the block).
        bias = bias_ref[...]                         # (mip + 3*oup, 1) f32
        b1 = bias[:mip]                              # conv1 (+bn1) bias
        bhw = bias[mip:mip + 2 * oup]                # conv_h | conv_w bias
        b3 = bias[mip + 2 * oup:]                    # convlow (+bn3) bias

        # Block-diagonal gate mask: rows < oup keep columns < h (a_h branch),
        # rows >= oup keep columns >= h (a_w branch).
        ri = lax.broadcasted_iota(jnp.int32, (2 * oup, h + w), 0)
        ci = lax.broadcasted_iota(jnp.int32, (2 * oup, h + w), 1)
        keep = (ri < oup) == (ci < h)

        # Short unrolled loop over the images of this grid step; the per-image
        # dependent-dot chains are independent, so the scheduler interleaves them.
        for b in range(b_tile):
            xb = x_ref[b]                            # (cin, hw)       bf16
            pb = p_ref[b]                            # (k_pad, hw)     bf16

            # conv1(+bn1) squeeze pre-pool and identity c1(x) share one dot.
            zi = jnp.dot(wsq_ref[...], xb,
                         preferred_element_type=jnp.float32)          # (mip+oup, hw)
            z = zi[:mip]                                               # (mip, hw)
            ident = zi[mip:]                                           # (oup, hw)

            # Coordinate pooling (mean over W | mean over H), reassociated to run
            # on the mip rows: pooled = (w1 @ x) @ pmat.
            pooled = jnp.dot(z.astype(bf16), pool_ref[...],
                             preferred_element_type=jnp.float32)       # (mip, h+w)

            # h_swish(bn1(conv1(.)))
            y = pooled + b1
            y = y * (jnp.clip(y + 3.0, 0.0, 6.0) * (1.0 / 6.0))

            # Excitation: conv_h | conv_w stacked, sigmoid, mask cross-branch cols.
            a = jax.nn.sigmoid(
                jnp.dot(whw_ref[...], y.astype(bf16),
                        preferred_element_type=jnp.float32) + bhw)     # (2*oup, h+w)
            a = jnp.where(keep, a, 0.0)

            # Single merged expansion: broadcast a_h over W and a_w over H.
            e = jnp.dot(a.astype(bf16), r_ref[...],
                        preferred_element_type=jnp.float32)            # (2*oup, hw)

            # convlow: 3x3 strided conv (im2col matmul) + folded eval-BN + ReLU.
            xl = jnp.dot(w3_ref[...], pb,
                         preferred_element_type=jnp.float32) + b3      # (oup, hw)
            xl = jnp.maximum(xl, 0.0)

            out_ref[b] = (e[:oup] * e[oup:] * xl + ident).astype(out_ref.dtype)

    return kernel


def _pick_b_tile(n, b_tile_max=4):
    """Largest divisor of n <= b_tile_max that keeps >= 2 grid steps (v7x: 2 TCs)."""
    if n == 1:
        return 1
    best = 1
    for d in range(1, min(b_tile_max, n) + 1):
        if n % d == 0 and n // d >= 2:
            best = d
    return best


@functools.partial(jax.jit, static_argnames=("stride", "b_tile_max"))
def mffm_forward(x_nchw, xlow_nchw, params, stride, b_tile_max=4):
    n, cin, h, w = x_nchw.shape
    hw = h * w
    f32, bf16 = jnp.float32, jnp.bfloat16

    x_flat = x_nchw.reshape(n, cin, hw).astype(bf16)     # free reshape (NCHW layout)

    # ---- im2col for the 3x3 strided convlow (wrapper-side; cheap at these sizes) ----
    cl = xlow_nchw.shape[1]
    Hl, Wl = xlow_nchw.shape[2], xlow_nchw.shape[3]
    Ho = (Hl - 1) // stride + 1
    Wo = (Wl - 1) // stride + 1
    assert Ho == h and Wo == w, "convlow output spatial size must match x"
    xp = jnp.pad(xlow_nchw, ((0, 0), (0, 0), (1, 1), (1, 1)))
    taps = []
    for ky in range(3):
        for kx in range(3):
            taps.append(
                xp[:, :, ky:ky + (Ho - 1) * stride + 1:stride,
                         kx:kx + (Wo - 1) * stride + 1:stride].reshape(n, cl, hw))
    patches = jnp.concatenate(taps, axis=1)               # (n, 9*cl, hw), tap-major
    k_raw = 9 * cl
    k_pad = -(-k_raw // 16) * 16                           # bf16 sublane multiple
    patches = jnp.pad(patches, ((0, 0), (0, k_pad - k_raw), (0, 0))).astype(bf16)

    # ---- compile-time constant pooling / expansion matrices (numpy, trace time) ----
    row = np.arange(hw) // w
    col = np.arange(hw) % w
    pool_h = (row[:, None] == np.arange(h)[None, :]).astype(np.float32) / w   # (hw, h)
    pool_w = (col[:, None] == np.arange(w)[None, :]).astype(np.float32) / h   # (hw, w)
    pmat = jnp.asarray(np.concatenate([pool_h, pool_w], axis=1), dtype=bf16)  # (hw, h+w)
    rmat = jnp.asarray(np.concatenate(
        [(np.arange(h)[:, None] == row[None, :]).astype(np.float32),          # (h, hw)
         (np.arange(w)[:, None] == col[None, :]).astype(np.float32)],         # (w, hw)
        axis=0), dtype=bf16)                                                   # (h+w, hw)

    # ---- fold / pack weights: bf16 matrices, f32 biases ----
    w1eff, b1eff = params["w1eff"], params["b1eff"]
    whw, bhw = params["whw"], params["bhw"]
    w3eff, b3eff = params["w3eff"], params["b3eff"]
    wc1 = params["wc1"]
    mip = w1eff.shape[0]
    oup = wc1.shape[0]
    planes = w3eff.shape[0]
    assert planes == oup, "gating multiply requires convlow planes == oup"

    wsq = jnp.concatenate([w1eff, wc1], axis=0).astype(bf16)            # (mip+oup, cin)
    whw_b = whw.astype(bf16)                                            # (2*oup, mip)
    w3p = jnp.pad(w3eff, ((0, 0), (0, k_pad - k_raw))).astype(bf16)     # (oup, k_pad)
    bias = jnp.concatenate([b1eff, bhw, b3eff], axis=0).astype(f32)     # (mip+3*oup, 1)

    b_tile = _pick_b_tile(n, b_tile_max)
    grid = (n // b_tile,)
    kernel = _make_kernel(b_tile, h, w, mip, oup)

    out_flat = pl.pallas_call(
        kernel,
        out_shape=jax.ShapeDtypeStruct((n, oup, hw), jnp.float32),
        grid_spec=pltpu.PrefetchScalarGridSpec(
            num_scalar_prefetch=0,
            grid=grid,
            in_specs=[
                pl.BlockSpec((b_tile, cin, hw), lambda i: (i, 0, 0)),      # x
                pl.BlockSpec((b_tile, k_pad, hw), lambda i: (i, 0, 0)),    # im2col
                pl.BlockSpec((hw, h + w), lambda i: (0, 0)),               # pooling mat
                pl.BlockSpec((h + w, hw), lambda i: (0, 0)),               # expansion mat
                pl.BlockSpec((mip + oup, cin), lambda i: (0, 0)),          # conv1 | c1
                pl.BlockSpec((2 * oup, mip), lambda i: (0, 0)),            # conv_h|conv_w
                pl.BlockSpec((oup, k_pad), lambda i: (0, 0)),              # convlow(+bn3)
                pl.BlockSpec((mip + 3 * oup, 1), lambda i: (0, 0)),        # packed biases
            ],
            out_specs=pl.BlockSpec((b_tile, oup, hw), lambda i: (i, 0, 0)),
        ),
        compiler_params=pltpu.CompilerParams(dimension_semantics=("parallel",)),
    )(x_flat, patches, pmat, rmat, wsq, whw_b, w3p, bias)

    return out_flat.reshape(n, oup, h, w)                 # already NCHW


# ----------------------------------------------------------------------------------
# Pure-JAX f32 reference mirroring the PyTorch forward literally (NCHW, concat/split)
# ----------------------------------------------------------------------------------
def mffm_ref_nchw(x, x_low, P, stride):
    def bn_eval(y, g, b, rm, rv):
        inv = g / jnp.sqrt(rv + EPS)
        return y * inv[None, :, None, None] + (b - rm * inv)[None, :, None, None]

    def conv1x1(y, w_oi, bias=None):
        out = jnp.einsum("nchw,oc->nohw", y, w_oi)
        if bias is not None:
            out = out + bias[None, :, None, None]
        return out

    xl = lax.conv_general_dilated(x_low, P["w3_oihw"], (stride, stride),
                                  ((1, 1), (1, 1)),
                                  dimension_numbers=("NCHW", "OIHW", "NCHW"))
    xl = jnp.maximum(bn_eval(xl, P["g3"], P["b3"], P["rm3"], P["rv3"]), 0.0)

    n, c, h, w = x.shape
    x_h = jnp.mean(x, axis=3, keepdims=True)                               # (n,c,h,1)
    x_w = jnp.transpose(jnp.mean(x, axis=2, keepdims=True), (0, 1, 3, 2))  # (n,c,w,1)
    y = jnp.concatenate([x_h, x_w], axis=2)                                # (n,c,h+w,1)
    y = conv1x1(y, P["w1_oi"], P["b1v"])
    y = bn_eval(y, P["g1"], P["bb1"], P["rm1"], P["rv1"])
    y = y * jnp.clip(y + 3.0, 0.0, 6.0) / 6.0
    xh2 = y[:, :, :h, :]
    xw2 = jnp.transpose(y[:, :, h:, :], (0, 1, 3, 2))
    a_h = jax.nn.sigmoid(conv1x1(xh2, P["wh_oi"], P["bhv"]))
    a_w = jax.nn.sigmoid(conv1x1(xw2, P["ww_oi"], P["bwv"]))
    out = a_w * a_h * xl
    identity = conv1x1(x, P["wc1_oi"])
    return out + identity


# ----------------------------------------------------------------------------------
def make_params(key, inp, oup, inplanes, planes, reduction=32):
    mip = max(8, inp // reduction)
    ks = jax.random.split(key, 16)
    f = jnp.float32

    # PyTorch-convention parameter tensors (deterministic synthetic init)
    w3_oihw = (jax.random.normal(ks[0], (planes, inplanes, 3, 3)) * 0.1).astype(f)
    g3 = (1.0 + 0.1 * jax.random.normal(ks[1], (planes,))).astype(f)
    b3 = (0.1 * jax.random.normal(ks[2], (planes,))).astype(f)
    rm3 = (0.1 * jax.random.normal(ks[3], (planes,))).astype(f)
    rv3 = (1.0 + 0.5 * jax.random.uniform(ks[4], (planes,))).astype(f)

    w1_oihw = (jax.random.normal(ks[5], (mip, inp, 1, 1)) * 0.2).astype(f)
    b1v = (0.1 * jax.random.normal(ks[6], (mip,))).astype(f)
    g1 = (1.0 + 0.1 * jax.random.normal(ks[7], (mip,))).astype(f)
    bb1 = (0.1 * jax.random.normal(ks[8], (mip,))).astype(f)
    rm1 = (0.1 * jax.random.normal(ks[9], (mip,))).astype(f)
    rv1 = (1.0 + 0.5 * jax.random.uniform(ks[10], (mip,))).astype(f)

    wh_oihw = (jax.random.normal(ks[11], (oup, mip, 1, 1)) * 0.2).astype(f)
    bhv = (0.1 * jax.random.normal(ks[12], (oup,))).astype(f)
    ww_oihw = (jax.random.normal(ks[13], (oup, mip, 1, 1)) * 0.2).astype(f)
    bwv = (0.1 * jax.random.normal(ks[14], (oup,))).astype(f)
    wc1_oihw = (jax.random.normal(ks[15], (oup, inp, 1, 1)) * 0.1).astype(f)

    # ---- kernel-side formats: eval-BN / biases folded, channels-first matrices ----
    bn3_scale = g3 / jnp.sqrt(rv3 + EPS)
    bn3_bias = b3 - rm3 * bn3_scale
    # im2col row order is (ky, kx) tap-major, channel-minor:
    w3mat = jnp.transpose(w3_oihw, (0, 2, 3, 1)).reshape(planes, 9 * inplanes)
    w3eff = w3mat * bn3_scale[:, None]
    b3eff = bn3_bias.reshape(planes, 1)

    bn1_scale = g1 / jnp.sqrt(rv1 + EPS)
    w1 = w1_oihw[:, :, 0, 0]                                  # (mip, inp)
    w1eff = w1 * bn1_scale[:, None]
    b1eff = (bn1_scale * b1v + (bb1 - rm1 * bn1_scale)).reshape(mip, 1)

    whw = jnp.concatenate([wh_oihw[:, :, 0, 0], ww_oihw[:, :, 0, 0]], axis=0)
    bhw = jnp.concatenate([bhv, bwv]).reshape(2 * oup, 1)

    kernel_params = {
        "w1eff": w1eff, "b1eff": b1eff,
        "whw": whw, "bhw": bhw,
        "w3eff": w3eff, "b3eff": b3eff,
        "wc1": wc1_oihw[:, :, 0, 0],                          # (oup, inp)
    }
    ref_params = {
        "w3_oihw": w3_oihw, "g3": g3, "b3": b3, "rm3": rm3, "rv3": rv3,
        "w1_oi": w1_oihw[:, :, 0, 0], "b1v": b1v,
        "g1": g1, "bb1": bb1, "rm1": rm1, "rv1": rv1,
        "wh_oi": wh_oihw[:, :, 0, 0], "bhv": bhv,
        "ww_oi": ww_oihw[:, :, 0, 0], "bwv": bwv,
        "wc1_oi": wc1_oihw[:, :, 0, 0],
    }
    return kernel_params, ref_params


if __name__ == "__main__":
    # x: (n, inp, h, w); x_low: (n, inplanes, h*stride, w*stride) with stride=2.
    # n=4 exercises the batch-folded path (B_tile=2, grid=(2,) → both v7x TCs busy).
    n, inp, oup = 4, 16, 16
    inplanes, planes, stride = 8, 16, 2
    h = w = 16

    key = jax.random.PRNGKey(0)
    kx, kl, kp = jax.random.split(key, 3)
    x = jax.random.normal(kx, (n, inp, h, w), dtype=jnp.float32)
    x_low = jax.random.normal(kl, (n, inplanes, h * stride, w * stride),
                              dtype=jnp.float32)

    kernel_params, ref_params = make_params(kp, inp, oup, inplanes, planes)

    out = mffm_forward(x, x_low, kernel_params, stride=stride)
    out = jax.block_until_ready(out)

    ref = jax.block_until_ready(mffm_ref_nchw(x, x_low, ref_params, stride))
    assert out.shape == (n, oup, h, w)
    # bf16 MXU inputs → relaxed tolerance (review: ~1e-2 scale).
    assert jnp.allclose(out, ref, atol=3e-2, rtol=3e-2), \
        float(jnp.max(jnp.abs(out - ref)))

    print("KERNEL_OK")
</pallas_src>

<mosaic_0001>
module attributes {stable_mosaic.version = 11 : i64} {
  func.func @kernel(%arg0: i32, %arg1: memref<2x16x256xbf16, #tpu.memory_space<vmem>>, %arg2: memref<2x80x256xbf16, #tpu.memory_space<vmem>>, %arg3: memref<256x32xbf16, #tpu.memory_space<vmem>>, %arg4: memref<32x256xbf16, #tpu.memory_space<vmem>>, %arg5: memref<24x16xbf16, #tpu.memory_space<vmem>>, %arg6: memref<32x8xbf16, #tpu.memory_space<vmem>>, %arg7: memref<16x80xbf16, #tpu.memory_space<vmem>>, %arg8: memref<56x1xf32, #tpu.memory_space<vmem>>, %arg9: memref<2x16x256xf32, #tpu.memory_space<vmem>>) attributes {dimension_semantics = [#tpu.dimension_semantics<parallel>], iteration_bounds = array<i64: 2>, scalar_prefetch = 0 : i64, scratch_operands = 0 : i64, tpu.core_type = #tpu.core_type<tc>, window_params = [{transform_indices = @transform_0, window_bounds = array<i64: 2, 16, 256>}, {transform_indices = @transform_1, window_bounds = array<i64: 2, 80, 256>}, {pipeline_mode = #tpu.pipeline_mode<synchronous>, transform_indices = @transform_2, window_bounds = array<i64: 256, 32>}, {pipeline_mode = #tpu.pipeline_mode<synchronous>, transform_indices = @transform_3, window_bounds = array<i64: 32, 256>}, {pipeline_mode = #tpu.pipeline_mode<synchronous>, transform_indices = @transform_4, window_bounds = array<i64: 24, 16>}, {pipeline_mode = #tpu.pipeline_mode<synchronous>, transform_indices = @transform_5, window_bounds = array<i64: 32, 8>}, {pipeline_mode = #tpu.pipeline_mode<synchronous>, transform_indices = @transform_6, window_bounds = array<i64: 16, 80>}, {pipeline_mode = #tpu.pipeline_mode<synchronous>, transform_indices = @transform_7, window_bounds = array<i64: 56, 1>}, {transform_indices = @transform_8, window_bounds = array<i64: 2, 16, 256>}]} {
    %c0 = arith.constant 0 : index
    %c0_0 = arith.constant 0 : index
    %0 = vector.load %arg8[%c0, %c0_0] : memref<56x1xf32, #tpu.memory_space<vmem>>, vector<56x1xf32>
    %1 = vector.extract_strided_slice %0 {offsets = [0, 0], sizes = [8, 1], strides = [1, 1]} : vector<56x1xf32> to vector<8x1xf32>
    %2 = vector.extract_strided_slice %0 {offsets = [8, 0], sizes = [32, 1], strides = [1, 1]} : vector<56x1xf32> to vector<32x1xf32>
    %3 = vector.extract_strided_slice %0 {offsets = [40, 0], sizes = [16, 1], strides = [1, 1]} : vector<56x1xf32> to vector<16x1xf32>
    %4 = tpu.iota {dimensions = array<i32: 0>} : vector<32x32xi32>
    %5 = tpu.iota {dimensions = array<i32: 1>} : vector<32x32xi32>
    %c16_i32 = arith.constant 16 : i32
    %6 = vector.broadcast %c16_i32 : i32 to vector<32x32xi32>
    %7 = arith.cmpi slt, %4, %6 : vector<32x32xi32>
    %c16_i32_1 = arith.constant 16 : i32
    %8 = vector.broadcast %c16_i32_1 : i32 to vector<32x32xi32>
    %9 = arith.cmpi slt, %5, %8 : vector<32x32xi32>
    %10 = arith.xori %7, %9 : vector<32x32xi1>
    %cst = arith.constant dense<true> : vector<32x32xi1>
    %11 = arith.xori %10, %cst : vector<32x32xi1>
    %c0_2 = arith.constant 0 : index
    %c0_3 = arith.constant 0 : index
    %c0_4 = arith.constant 0 : index
    %12 = vector.load %arg1[%c0_2, %c0_3, %c0_4] : memref<2x16x256xbf16, #tpu.memory_space<vmem>>, vector<1x16x256xbf16>
    %13 = vector.shape_cast %12 : vector<1x16x256xbf16> to vector<16x256xbf16>
    %c0_5 = arith.constant 0 : index
    %c0_6 = arith.constant 0 : index
    %c0_7 = arith.constant 0 : index
    %14 = vector.load %arg2[%c0_5, %c0_6, %c0_7] : memref<2x80x256xbf16, #tpu.memory_space<vmem>>, vector<1x80x256xbf16>
    %15 = vector.shape_cast %14 : vector<1x80x256xbf16> to vector<80x256xbf16>
    %c0_8 = arith.constant 0 : index
    %c0_9 = arith.constant 0 : index
    %16 = vector.load %arg5[%c0_8, %c0_9] : memref<24x16xbf16, #tpu.memory_space<vmem>>, vector<24x16xbf16>
    %cst_10 = arith.constant dense<0.000000e+00> : vector<24x256xf32>
    %17 = tpu.matmul %16, %13, %cst_10 {dimension_numbers = #tpu.dot_dimension_numbers<[1], [0], [0], [1], [0, 0, 1, 1], [], []>} : vector<24x16xbf16>, vector<16x256xbf16>, vector<24x256xf32> -> vector<24x256xf32>
    %18 = vector.extract_strided_slice %17 {offsets = [0, 0], sizes = [8, 256], strides = [1, 1]} : vector<24x256xf32> to vector<8x256xf32>
    %19 = vector.extract_strided_slice %17 {offsets = [8, 0], sizes = [16, 256], strides = [1, 1]} : vector<24x256xf32> to vector<16x256xf32>
    %20 = arith.truncf %18 : vector<8x256xf32> to vector<8x256xbf16>
    %c0_11 = arith.constant 0 : index
    %c0_12 = arith.constant 0 : index
    %21 = vector.load %arg3[%c0_11, %c0_12] : memref<256x32xbf16, #tpu.memory_space<vmem>>, vector<256x32xbf16>
    %cst_13 = arith.constant dense<0.000000e+00> : vector<8x32xf32>
    %22 = tpu.matmul %20, %21, %cst_13 {dimension_numbers = #tpu.dot_dimension_numbers<[1], [0], [0], [1], [0, 0, 1, 1], [], []>} : vector<8x256xbf16>, vector<256x32xbf16>, vector<8x32xf32> -> vector<8x32xf32>
    %23 = vector.broadcast %1 : vector<8x1xf32> to vector<8x32xf32>
    %24 = arith.addf %22, %23 : vector<8x32xf32>
    %cst_14 = arith.constant 3.000000e+00 : f32
    %25 = vector.broadcast %cst_14 : f32 to vector<8x32xf32>
    %26 = arith.addf %24, %25 : vector<8x32xf32>
    %cst_15 = arith.constant 0.000000e+00 : f32
    %cst_16 = arith.constant 6.000000e+00 : f32
    %27 = vector.broadcast %cst_15 : f32 to vector<8x32xf32>
    %28 = arith.maximumf %27, %26 : vector<8x32xf32>
    %29 = vector.broadcast %cst_16 : f32 to vector<8x32xf32>
    %30 = arith.minimumf %29, %28 : vector<8x32xf32>
    %cst_17 = arith.constant 0.166666672 : f32
    %31 = vector.broadcast %cst_17 : f32 to vector<8x32xf32>
    %32 = arith.mulf %30, %31 : vector<8x32xf32>
    %33 = arith.mulf %24, %32 : vector<8x32xf32>
    %c0_18 = arith.constant 0 : index
    %c0_19 = arith.constant 0 : index
    %34 = vector.load %arg6[%c0_18, %c0_19] : memref<32x8xbf16, #tpu.memory_space<vmem>>, vector<32x8xbf16>
    %35 = arith.truncf %33 : vector<8x32xf32> to vector<8x32xbf16>
    %cst_20 = arith.constant dense<0.000000e+00> : vector<32x32xf32>
    %36 = tpu.matmul %34, %35, %cst_20 {dimension_numbers = #tpu.dot_dimension_numbers<[1], [0], [0], [1], [0, 0, 1, 1], [], []>} : vector<32x8xbf16>, vector<8x32xbf16>, vector<32x32xf32> -> vector<32x32xf32>
    %37 = vector.broadcast %2 : vector<32x1xf32> to vector<32x32xf32>
    %38 = arith.addf %36, %37 : vector<32x32xf32>
    %39 = arith.negf %38 : vector<32x32xf32>
    %40 = math.exp %39 : vector<32x32xf32>
    %cst_21 = arith.constant 1.000000e+00 : f32
    %41 = vector.broadcast %cst_21 : f32 to vector<32x32xf32>
    %42 = arith.addf %41, %40 : vector<32x32xf32>
    %43 = arith.divf %41, %42 : vector<32x32xf32>
    %cst_22 = arith.constant 0.000000e+00 : f32
    %44 = vector.broadcast %cst_22 : f32 to vector<32x32xf32>
    %45 = arith.select %11, %43, %44 : vector<32x32xi1>, vector<32x32xf32>
    %46 = arith.truncf %45 : vector<32x32xf32> to vector<32x32xbf16>
    %c0_23 = arith.constant 0 : index
    %c0_24 = arith.constant 0 : index
    %47 = vector.load %arg4[%c0_23, %c0_24] : memref<32x256xbf16, #tpu.memory_space<vmem>>, vector<32x256xbf16>
    %cst_25 = arith.constant dense<0.000000e+00> : vector<32x256xf32>
    %48 = tpu.matmul %46, %47, %cst_25 {dimension_numbers = #tpu.dot_dimension_numbers<[1], [0], [0], [1], [0, 0, 1, 1], [], []>} : vector<32x32xbf16>, vector<32x256xbf16>, vector<32x256xf32> -> vector<32x256xf32>
    %c0_26 = arith.constant 0 : index
    %c0_27 = arith.constant 0 : index
    %49 = vector.load %arg7[%c0_26, %c0_27] : memref<16x80xbf16, #tpu.memory_space<vmem>>, vector<16x80xbf16>
    %cst_28 = arith.constant dense<0.000000e+00> : vector<16x256xf32>
    %50 = tpu.matmul %49, %15, %cst_28 {dimension_numbers = #tpu.dot_dimension_numbers<[1], [0], [0], [1], [0, 0, 1, 1], [], []>} : vector<16x80xbf16>, vector<80x256xbf16>, vector<16x256xf32> -> vector<16x256xf32>
    %51 = vector.broadcast %3 : vector<16x1xf32> to vector<16x256xf32>
    %52 = arith.addf %50, %51 : vector<16x256xf32>
    %cst_29 = arith.constant 0.000000e+00 : f32
    %53 = vector.broadcast %cst_29 : f32 to vector<16x256xf32>
    %54 = arith.maximumf %52, %53 : vector<16x256xf32>
    %55 = vector.extract_strided_slice %48 {offsets = [0, 0], sizes = [16, 256], strides = [1, 1]} : vector<32x256xf32> to vector<16x256xf32>
    %56 = vector.extract_strided_slice %48 {offsets = [16, 0], sizes = [16, 256], strides = [1, 1]} : vector<32x256xf32> to vector<16x256xf32>
    %57 = arith.mulf %55, %56 : vector<16x256xf32>
    %58 = arith.mulf %57, %54 : vector<16x256xf32>
    %59 = arith.addf %58, %19 : vector<16x256xf32>
    %c0_30 = arith.constant 0 : index
    %c0_31 = arith.constant 0 : index
    %c0_32 = arith.constant 0 : index
    %60 = vector.load %arg9[%c0_30, %c0_31, %c0_32] : memref<2x16x256xf32, #tpu.memory_space<vmem>>, vector<1x16x256xf32>
    %61 = vector.shape_cast %60 : vector<1x16x256xf32> to vector<16x256xf32>
    %62 = vector.shape_cast %59 : vector<16x256xf32> to vector<1x16x256xf32>
    tpu.vector_store %arg9[%c0_30, %c0_31, %c0_32], %62 {strides = array<i32>} : memref<2x16x256xf32, #tpu.memory_space<vmem>>, vector<1x16x256xf32>,
    %c1 = arith.constant 1 : index
    %c0_33 = arith.constant 0 : index
    %c0_34 = arith.constant 0 : index
    %63 = vector.load %arg1[%c1, %c0_33, %c0_34] : memref<2x16x256xbf16, #tpu.memory_space<vmem>>, vector<1x16x256xbf16>
    %64 = vector.shape_cast %63 : vector<1x16x256xbf16> to vector<16x256xbf16>
    %c1_35 = arith.constant 1 : index
    %c0_36 = arith.constant 0 : index
    %c0_37 = arith.constant 0 : index
    %65 = vector.load %arg2[%c1_35, %c0_36, %c0_37] : memref<2x80x256xbf16, #tpu.memory_space<vmem>>, vector<1x80x256xbf16>
    %66 = vector.shape_cast %65 : vector<1x80x256xbf16> to vector<80x256xbf16>
    %c0_38 = arith.constant 0 : index
    %c0_39 = arith.constant 0 : index
    %67 = vector.load %arg5[%c0_38, %c0_39] : memref<24x16xbf16, #tpu.memory_space<vmem>>, vector<24x16xbf16>
    %cst_40 = arith.constant dense<0.000000e+00> : vector<24x256xf32>
    %68 = tpu.matmul %67, %64, %cst_40 {dimension_numbers = #tpu.dot_dimension_numbers<[1], [0], [0], [1], [0, 0, 1, 1], [], []>} : vector<24x16xbf16>, vector<16x256xbf16>, vector<24x256xf32> -> vector<24x256xf32>
    %69 = vector.extract_strided_slice %68 {offsets = [0, 0], sizes = [8, 256], strides = [1, 1]} : vector<24x256xf32> to vector<8x256xf32>
    %70 = vector.extract_strided_slice %68 {offsets = [8, 0], sizes = [16, 256], strides = [1, 1]} : vector<24x256xf32> to vector<16x256xf32>
    %71 = arith.truncf %69 : vector<8x256xf32> to vector<8x256xbf16>
    %c0_41 = arith.constant 0 : index
    %c0_42 = arith.constant 0 : index
    %72 = vector.load %arg3[%c0_41, %c0_42] : memref<256x32xbf16, #tpu.memory_space<vmem>>, vector<256x32xbf16>
    %cst_43 = arith.constant dense<0.000000e+00> : vector<8x32xf32>
    %73 = tpu.matmul %71, %72, %cst_43 {dimension_numbers = #tpu.dot_dimension_numbers<[1], [0], [0], [1], [0, 0, 1, 1], [], []>} : vector<8x256xbf16>, vector<256x32xbf16>, vector<8x32xf32> -> vector<8x32xf32>
    %74 = vector.broadcast %1 : vector<8x1xf32> to vector<8x32xf32>
    %75 = arith.addf %73, %74 : vector<8x32xf32>
    %cst_44 = arith.constant 3.000000e+00 : f32
    %76 = vector.broadcast %cst_44 : f32 to vector<8x32xf32>
    %77 = arith.addf %75, %76 : vector<8x32xf32>
    %cst_45 = arith.constant 0.000000e+00 : f32
    %cst_46 = arith.constant 6.000000e+00 : f32
    %78 = vector.broadcast %cst_45 : f32 to vector<8x32xf32>
    %79 = arith.maximumf %78, %77 : vector<8x32xf32>
    %80 = vector.broadcast %cst_46 : f32 to vector<8x32xf32>
    %81 = arith.minimumf %80, %79 : vector<8x32xf32>
    %cst_47 = arith.constant 0.166666672 : f32
    %82 = vector.broadcast %cst_47 : f32 to vector<8x32xf32>
    %83 = arith.mulf %81, %82 : vector<8x32xf32>
    %84 = arith.mulf %75, %83 : vector<8x32xf32>
    %c0_48 = arith.constant 0 : index
    %c0_49 = arith.constant 0 : index
    %85 = vector.load %arg6[%c0_48, %c0_49] : memref<32x8xbf16, #tpu.memory_space<vmem>>, vector<32x8xbf16>
    %86 = arith.truncf %84 : vector<8x32xf32> to vector<8x32xbf16>
    %cst_50 = arith.constant dense<0.000000e+00> : vector<32x32xf32>
    %87 = tpu.matmul %85, %86, %cst_50 {dimension_numbers = #tpu.dot_dimension_numbers<[1], [0], [0], [1], [0, 0, 1, 1], [], []>} : vector<32x8xbf16>, vector<8x32xbf16>, vector<32x32xf32> -> vector<32x32xf32>
    %88 = vector.broadcast %2 : vector<32x1xf32> to vector<32x32xf32>
    %89 = arith.addf %87, %88 : vector<32x32xf32>
    %90 = arith.negf %89 : vector<32x32xf32>
    %91 = math.exp %90 : vector<32x32xf32>
    %cst_51 = arith.constant 1.000000e+00 : f32
    %92 = vector.broadcast %cst_51 : f32 to vector<32x32xf32>
    %93 = arith.addf %92, %91 : vector<32x32xf32>
    %94 = arith.divf %92, %93 : vector<32x32xf32>
    %cst_52 = arith.constant 0.000000e+00 : f32
    %95 = vector.broadcast %cst_52 : f32 to vector<32x32xf32>
    %96 = arith.select %11, %94, %95 : vector<32x32xi1>, vector<32x32xf32>
    %97 = arith.truncf %96 : vector<32x32xf32> to vector<32x32xbf16>
    %c0_53 = arith.constant 0 : index
    %c0_54 = arith.constant 0 : index
    %98 = vector.load %arg4[%c0_53, %c0_54] : memref<32x256xbf16, #tpu.memory_space<vmem>>, vector<32x256xbf16>
    %cst_55 = arith.constant dense<0.000000e+00> : vector<32x256xf32>
    %99 = tpu.matmul %97, %98, %cst_55 {dimension_numbers = #tpu.dot_dimension_numbers<[1], [0], [0], [1], [0, 0, 1, 1], [], []>} : vector<32x32xbf16>, vector<32x256xbf16>, vector<32x256xf32> -> vector<32x256xf32>
    %c0_56 = arith.constant 0 : index
    %c0_57 = arith.constant 0 : index
    %100 = vector.load %arg7[%c0_56, %c0_57] : memref<16x80xbf16, #tpu.memory_space<vmem>>, vector<16x80xbf16>
    %cst_58 = arith.constant dense<0.000000e+00> : vector<16x256xf32>
    %101 = tpu.matmul %100, %66, %cst_58 {dimension_numbers = #tpu.dot_dimension_numbers<[1], [0], [0], [1], [0, 0, 1, 1], [], []>} : vector<16x80xbf16>, vector<80x256xbf16>, vector<16x256xf32> -> vector<16x256xf32>
    %102 = vector.broadcast %3 : vector<16x1xf32> to vector<16x256xf32>
    %103 = arith.addf %101, %102 : vector<16x256xf32>
    %cst_59 = arith.constant 0.000000e+00 : f32
    %104 = vector.broadcast %cst_59 : f32 to vector<16x256xf32>
    %105 = arith.maximumf %103, %104 : vector<16x256xf32>
    %106 = vector.extract_strided_slice %99 {offsets = [0, 0], sizes = [16, 256], strides = [1, 1]} : vector<32x256xf32> to vector<16x256xf32>
    %107 = vector.extract_strided_slice %99 {offsets = [16, 0], sizes = [16, 256], strides = [1, 1]} : vector<32x256xf32> to vector<16x256xf32>
    %108 = arith.mulf %106, %107 : vector<16x256xf32>
    %109 = arith.mulf %108, %105 : vector<16x256xf32>
    %110 = arith.addf %109, %70 : vector<16x256xf32>
    %c1_60 = arith.constant 1 : index
    %c0_61 = arith.constant 0 : index
    %c0_62 = arith.constant 0 : index
    %111 = vector.load %arg9[%c1_60, %c0_61, %c0_62] : memref<2x16x256xf32, #tpu.memory_space<vmem>>, vector<1x16x256xf32>
    %112 = vector.shape_cast %111 : vector<1x16x256xf32> to vector<16x256xf32>
    %113 = vector.shape_cast %110 : vector<16x256xf32> to vector<1x16x256xf32>
    tpu.vector_store %arg9[%c1_60, %c0_61, %c0_62], %113 {strides = array<i32>} : memref<2x16x256xf32, #tpu.memory_space<vmem>>, vector<1x16x256xf32>,
    return
  }
  func.func @transform_0(%arg0: i32) -> (i32, i32, i32) {
    %c0_i32 = arith.constant 0 : i32
    %c0_i32_0 = arith.constant 0 : i32
    %c0_i32_1 = arith.constant 0 : i32
    return %arg0, %c0_i32, %c0_i32_0 : i32, i32, i32
  }
  func.func @transform_1(%arg0: i32) -> (i32, i32, i32) {
    %c0_i32 = arith.constant 0 : i32
    %c0_i32_0 = arith.constant 0 : i32
    %c0_i32_1 = arith.constant 0 : i32
    return %arg0, %c0_i32, %c0_i32_0 : i32, i32, i32
  }
  func.func @transform_2(%arg0: i32) -> (i32, i32) {
    %c0_i32 = arith.constant 0 : i32
    %c0_i32_0 = arith.constant 0 : i32
    %c0_i32_1 = arith.constant 0 : i32
    return %c0_i32, %c0_i32_0 : i32, i32
  }
  func.func @transform_3(%arg0: i32) -> (i32, i32) {
    %c0_i32 = arith.constant 0 : i32
    %c0_i32_0 = arith.constant 0 : i32
    %c0_i32_1 = arith.constant 0 : i32
    return %c0_i32, %c0_i32_0 : i32, i32
  }
  func.func @transform_4(%arg0: i32) -> (i32, i32) {
    %c0_i32 = arith.constant 0 : i32
    %c0_i32_0 = arith.constant 0 : i32
    %c0_i32_1 = arith.constant 0 : i32
    return %c0_i32, %c0_i32_0 : i32, i32
  }
  func.func @transform_5(%arg0: i32) -> (i32, i32) {
    %c0_i32 = arith.constant 0 : i32
    %c0_i32_0 = arith.constant 0 : i32
    %c0_i32_1 = arith.constant 0 : i32
    return %c0_i32, %c0_i32_0 : i32, i32
  }
  func.func @transform_6(%arg0: i32) -> (i32, i32) {
    %c0_i32 = arith.constant 0 : i32
    %c0_i32_0 = arith.constant 0 : i32
    %c0_i32_1 = arith.constant 0 : i32
    return %c0_i32, %c0_i32_0 : i32, i32
  }
  func.func @transform_7(%arg0: i32) -> (i32, i32) {
    %c0_i32 = arith.constant 0 : i32
    %c0_i32_0 = arith.constant 0 : i32
    %c0_i32_1 = arith.constant 0 : i32
    return %c0_i32, %c0_i32_0 : i32, i32
  }
  func.func @transform_8(%arg0: i32) -> (i32, i32, i32) {
    %c0_i32 = arith.constant 0 : i32
    %c0_i32_0 = arith.constant 0 : i32
    %c0_i32_1 = arith.constant 0 : i32
    return %arg0, %c0_i32, %c0_i32_0 : i32, i32, i32
  }
}

</mosaic_0001>

<bundles_post_ra>
// kernel: mffm_forward.1
= control target key start
LH: loop header
LB: loop body
LE: loop exit
PB: predicated region body
PF: predicated region fallthrough
CT: control target
= control target key end

     0   :  { %s2080_s27 = smov 0   ;;  %s2512_s0 = inlined_call_operand.vmem [shape: bf16[4,16,256], index: 0, kind: input, shape index: {}]   ;;  %s2513_s1 = inlined_call_operand.vmem [shape: bf16[4,80,256], index: 1, kind: input, shape index: {}]   ;;  %s2514_s2 = inlined_call_operand.vmem [shape: bf16[256,32], index: 2, kind: input, shape index: {}]   ;;  %s2515_s3 = inlined_call_operand.vmem [shape: bf16[32,256], index: 3, kind: input, shape index: {}]   ;;  %s2516_s4 = inlined_call_operand.vmem [shape: bf16[24,16], index: 4, kind: input, shape index: {}]   ;;  %s2517_s5 = inlined_call_operand.vmem [shape: bf16[32,8], index: 5, kind: input, shape index: {}]   ;;  %s2518_s6 = inlined_call_operand.vmem [shape: bf16[16,80], index: 6, kind: input, shape index: {}]   ;;  %s2519_s7 = inlined_call_operand.vmem [shape: f32[56,1], index: 7, kind: input, shape index: {}]   ;;  %s2520_s8 = inlined_call_operand.vmem [shape: f32[4,16,256], index: 8, kind: output, shape index: {}]  }
   0x1 LB: > { %s1554_s28 = sadd.s32 4294967295, %s2031_s27   ;;  %p1558_p0 = scmp.ge.s32.totalorder %s2031_s27, 1  ;;  %s2031_s27 = sphi %s2080_s27, %s18_s27  }
   0x2   : > { %p276_p1 = scmp.lt.s32.totalorder %s2031_s27, 3 }
   0x4   : > { %p277_p2 = pnand %p1558_p0, %p276_p1 }
   0x5   : > { %s1559_s29 = sshll.u32 (!%p277_p2), %s1554_s28, 1 }
   0x6   : > { %280 = sbr.rel (%p277_p2) target bundleno = 1115 (0x45b), region = 52  ;;  %p319_p3 = scmp.lt.s32.totalorder (!%p277_p2), %s1559_s29, 3 }
   0xb   : > { %v1935_v0 = vld [vmem:[%s2514_s2 + $0x78] sm:$0xff]  ;;  %v1934_v2 = vld [vmem:[%s2514_s2 + $0x70] sm:$0xff]  ;;  %s2530_s29 = smov (!%p319_p3, %s1559_s29), 3  ;;  %v1933_v4 = vld [vmem:[%s2514_s2 + $0x68] sm:$0xff]  ;;  %vm400_vm0 = vcmask 130048   ;;  %v2033_v28 = vmov 0  }
   0xc   : > { %v1927_v1 = vld [vmem:[%s2514_s2 + $0x38] sm:$0xff]  ;;  %591 = vmatpush.bf16.msra.mxu3 %v1935_v0  ;;  %v1926_v3 = vld [vmem:[%s2514_s2 + $0x30] sm:$0xff]  ;;  %s1905_s16 = sshll.u32 %s2530_s29, 4  ;;  %v1925_v5 = vld [vmem:[%s2514_s2 + $0x28] sm:$0xff]  ;;  %s1979_s25 = smul.u32 80, %s2530_s29  ;;  %1990 = vset.pattern.permute.xlu0 %v2033_v28  ;;  %vm892_vm1 = vcmask 654336  }
   0xd   : > { %578 = vmatpush.bf16.msra.mxu2 %v1927_v1  ;;  %s2106_s19 = scalar_lea.vmem %s2512_s0, %s1905_s16  ;;  %v1919_v12 = vld [vmem:[%s2516_s4] sm:$0xff]  ;;  %v1931_v15 = vld [vmem:[%s2514_s2 + $0x58] sm:$0xff]  ;;  %v1930_v17 = vld [vmem:[%s2514_s2 + $0x50] sm:$0xff]  ;;  %1991 = vset.pattern.permute.xlu1 %v2033_v28  ;;  %vm651_vm2 = vcmask 1043456   ;;  %vm644_vm3 = vcmask 64512   ;;  %vm2034_vm6 = vmmov 1  }
   0xe   : > { %v1573_v6 = vld [vmem:[%s2106_s19] sm:$0xf]  ;;  %v1908_v7 = vld [vmem:[%s2106_s19 + $0x4] sm:$0xf0]  ;;  %v1907_v8 = vld [vmem:[%s2106_s19 + $0x4] sm:$0xf]  ;;  %s2154_s30 = scalar_lea.vmem %s2513_s1, %s1979_s25  ;;  %1992 = vset.pattern.permute.xlu2 %v2033_v28 }
   0xf   : > { %v1574_v9 = vor.u32 %v1908_v7, %v1573_v6  ;;  %v1575_v10 = vld [vmem:[%s2106_s19 + $0x8] sm:$0xf0]  ;;  %v1932_v13 = vld [vmem:[%s2514_s2 + $0x60] sm:$0xff]  ;;  %v1923_v16 = vld [vmem:[%s2514_s2 + $0x18] sm:$0xff]  ;;  %s1906_s12 = sshll.u32 %s2530_s29, 5 }
  0x10   : > { %592 = vmatpush.bf16.msra.mxu3 %v1934_v2  ;;  %v1578_v11 = vor.u32 %v1907_v8, %v1575_v10  ;;  %v1924_v14 = vld [vmem:[%s2514_s2 + $0x20] sm:$0xff]  ;;  %v1922_v18 = vld [vmem:[%s2514_s2 + $0x10] sm:$0xff]  ;;  %v1929_v19 = vld [vmem:[%s2514_s2 + $0x48] sm:$0xff] }
  0x11   : > { %579 = vmatpush.bf16.msra.mxu2 %v1926_v3  ;;  %414 = vmatpush.bf16.msra.mxu0 %v1574_v9  ;;  %v1921_v20 = vld [vmem:[%s2514_s2 + $0x8] sm:$0xff]  ;;  %v1928_v21 = vld [vmem:[%s2514_s2 + $0x40] sm:$0xff]  ;;  %v1711_v26 = vld [vmem:[%s2154_s30 + $0x30] sm:$0xf] }
  0x12   : > { %432 = vmatpush.bf16.msra.mxu1 %v1578_v11  ;;  %v1719_v22 = vld [vmem:[%s2154_s30 + $0x40] sm:$0xf]  ;;  %v1918_v23 = vld [vmem:[%s2154_s30 + $0x44] sm:$0xf0]  ;;  %v1916_v27 = vld [vmem:[%s2154_s30 + $0x34] sm:$0xf0] }
  0x13   : > { %v1920_v24 = vld [vmem:[%s2514_s2] sm:$0xff]  ;;  %v1720_v25 = vor.u32 %v1918_v23, %v1719_v22  ;;  %v1712_v29 = vor.u32 %v1916_v27, %v1711_v26  ;;  %v1914_v32 = vld [vmem:[%s2154_s30 + $0x24] sm:$0xf0]  ;;  %v1695_v34 = vld [vmem:[%s2154_s30 + $0x10] sm:$0xf] }
  0x14   : > { %593 = vmatpush.bf16.msra.mxu3 %v1933_v4  ;;  %1579 = vmatmul.msk.bf16.vlgmr.msra.gmra.mxu0 %vm400_vm0, %v1919_v12  ;;  %v340_v30 = vld [vmem:[%s2519_s7] sm:$0xff]  ;;  %v1912_v35 = vld [vmem:[%s2154_s30 + $0x14] sm:$0xf0]  ;;  %v341_v36 = vld [vmem:[%s2519_s7 + $0x8] sm:$0xff] }
  0x15   : > { %580 = vmatpush.bf16.msra.mxu2 %v1925_v5  ;;  %1581 = vmatmul.msk.bf16.vlgmr.msra.gmra.mxu1 %vm400_vm0, %v1919_v12  ;;  %v1703_v31 = vld [vmem:[%s2154_s30 + $0x20] sm:$0xf]  ;;  %v1696_v37 = vor.u32 %v1912_v35, %v1695_v34  ;;  %v1910_v39 = vld [vmem:[%s2154_s30 + $0x4] sm:$0xf0]  ;;  %v346_v41 = vld [vmem:[%s2519_s7 + $0x30] sm:$0xff] }
  0x16   : > { %479 = vperm.xlu0 %1990, %v340_v30   ;;  %v1704_v33 = vor.u32 %v1914_v32, %v1703_v31  ;;  %v1687_v38 = vld [vmem:[%s2154_s30] sm:$0xf]  ;;  %v1943_v42 = vld [vmem:[%s2106_s19 + $0x14] sm:$0xf]  ;;  %v1747_v43 = vld [vmem:[%s2106_s19 + $0x18] sm:$0xf0] }
  0x17   : > { %v1688_v40 = vor.u32 %v1910_v39, %v1687_v38  ;;  %v1750_v47 = vor.u32 %v1943_v42, %v1747_v43  ;;  %v2183_v49 = vld [vmem:[%s2518_s6] sm:$0xff]  ;;  %v381_v51 = vld [vmem:[%s2516_s4 + $0x8] sm:$0xf]  ;;  %v342_v56 = vld [vmem:[%s2519_s7 + $0x10] sm:$0xff] }
  0x18   : > { %594 = vmatpush.bf16.msra.mxu3 %v1932_v13  ;;  %v2190_v50 = vld [vmem:[%s2516_s4] sm:$0xff]  ;;  %v387_v52 = vunpack.c.l.b16 %v381_v51  ;;  %621 = vperm.xlu1 %1991, %v342_v56   ;;  %v343_v63 = vld [vmem:[%s2519_s7 + $0x18] sm:$0xff]  ;;  %v1721_v4 = vld [vmem:[%s2154_s30 + $0x48] sm:$0xf0] }
  0x19   : > { %581 = vmatpush.bf16.msra.mxu2 %v1924_v14  ;;  %v1917_v3 = vld [vmem:[%s2154_s30 + $0x44] sm:$0xf]  ;;  %v1915_v8 = vld [vmem:[%s2154_s30 + $0x34] sm:$0xf]  ;;  %v1713_v9 = vld [vmem:[%s2154_s30 + $0x38] sm:$0xf0] }
  0x1a   : > { %v389_v53 = vpack.c.b16 %v387_v52, %v387_v52  ;;  %v1724_v7 = vor.u32 %v1917_v3, %v1721_v4  ;;  %v1936_v11 = vld [vmem:[%s2517_s5] sm:$0xff]  ;;  %v1716_v12 = vor.u32 %v1915_v8, %v1713_v9  ;;  %v1705_v14 = vld [vmem:[%s2154_s30 + $0x28] sm:$0xf0]  ;;  %v1971_v22 = vld [vmem:[%s2514_s2 + $0x78] sm:$0xff] }
  0x1b   : > { %v1913_v13 = vld [vmem:[%s2154_s30 + $0x24] sm:$0xf]  ;;  %v1937_v23 = vld [vmem:[%s2517_s5 + $0x8] sm:$0xff]  ;;  %v1966_v31 = vld [vmem:[%s2514_s2 + $0x50] sm:$0xff] }
  0x1c   : > { %595 = vmatpush.bf16.msra.mxu3 %v1931_v15  ;;  %v1708_v15 = vor.u32 %v1913_v13, %v1705_v14  ;;  %v344_v26 = vld [vmem:[%s2519_s7 + $0x20] sm:$0xff]  ;;  %v345_v30 = vld [vmem:[%s2519_s7 + $0x28] sm:$0xff]  ;;  %v1891_v34 = vld [vmem:[%s2154_s30 + $0x90] sm:$0xf] }
  0x1d   : > { %582 = vmatpush.bf16.msra.mxu2 %v1923_v16  ;;  %v1911_v16 = vld [vmem:[%s2154_s30 + $0x14] sm:$0xf]  ;;  %631 = vperm.xlu2 %1992, %v344_v26   ;;  %v1968_v28 = vld [vmem:[%s2514_s2 + $0x60] sm:$0xff]  ;;  %v1954_v35 = vld [vmem:[%s2154_s30 + $0x94] sm:$0xf0] }
  0x1e   : > { %616 = vperm.xlu0 %1990, %v341_v36   ;;  %v1964_v36 = vld [vmem:[%s2514_s2 + $0x40] sm:$0xff]  ;;  %v1875_v43 = vld [vmem:[%s2154_s30 + $0x70] sm:$0xf]  ;;  %v1946_v51 = vld [vmem:[%s2154_s30 + $0x54] sm:$0xf0] }
  0x1f   : > { %v1883_v39 = vld [vmem:[%s2154_s30 + $0x80] sm:$0xf]  ;;  %v1665_v9 = vld [vmem:[%s2515_s3 + $0x8] sm:$0xf0] }
  0x20   : > { %596 = vmatpush.bf16.msra.mxu3 %v1930_v17  ;;  %626 = vperm.xlu1 %1991, %v343_v63   ;;  %v1697_v17 = vld [vmem:[%s2154_s30 + $0x18] sm:$0xf0]  ;;  %v1940_v63 = vld [vmem:[%s2515_s3 + $0x14] sm:$0xf]  ;;  %v1663_v4 = vld [vmem:[%s2515_s3] sm:$0xf] }
  0x21   : > { %583 = vmatpush.bf16.msra.mxu2 %v1922_v18  ;;  %v1700_v18 = vor.u32 %v1911_v16, %v1697_v17 }
  0x24   : > { %597 = vmatpush.bf16.msra.mxu3 %v1929_v19  ;;  %1580 = vmatmul.msk.bf16.gmra.mxu0 %vm400_vm0, %v389_v53  ;;  %v1909_v19 = vld [vmem:[%s2154_s30 + $0x4] sm:$0xf] }
  0x25   : > { %584 = vmatpush.bf16.msra.mxu2 %v1921_v20  ;;  %1582 = vmatmul.msk.bf16.gmra.mxu1 %vm400_vm0, %v389_v53  ;;  %v1689_v20 = vld [vmem:[%s2154_s30 + $0x8] sm:$0xf0]  ;;  %v2276_v53 = vld [vmem:[%s2518_s6] sm:$0xff] }
  0x26   : > { %834 = vperm.xlu0 %1990, %v346_v41   ;;  %829 = vperm.xlu2 %1992, %v345_v30  }
  0x28   : > { %598 = vmatpush.bf16.msra.mxu3 %v1928_v21  ;;  %v1692_v21 = vor.u32 %v1909_v19, %v1689_v20 }
  0x29   : > { %585 = vmatpush.bf16.msra.mxu2 %v1920_v24  ;;  %v1970_v24 = vld [vmem:[%s2514_s2 + $0x70] sm:$0xff] }
  0x2c   : > { %899 = vmatpush.bf16.msrb.mxu3 %v1720_v25  ;;  %v1969_v25 = vld [vmem:[%s2514_s2 + $0x68] sm:$0xff] }
  0x30   : > { %900 = vmatpush.bf16.msrb.mxu3 %v1712_v29  ;;  %v1967_v29 = vld [vmem:[%s2514_s2 + $0x58] sm:$0xff] }
  0x34   : > { %901 = vmatpush.bf16.msrb.mxu3 %v1704_v33  ;;  %v1965_v33 = vld [vmem:[%s2514_s2 + $0x48] sm:$0xff] }
  0x38   : > { %902 = vmatpush.bf16.msrb.mxu3 %v1696_v37  ;;  %v1892_v37 = vor.u32 %v1954_v35, %v1891_v34 }
  0x3c   : > { %903 = vmatpush.bf16.msrb.mxu3 %v1688_v40  ;;  %v1952_v40 = vld [vmem:[%s2154_s30 + $0x84] sm:$0xf0] }
  0x3d   : > { %v1884_v42 = vor.u32 %v1952_v40, %v1883_v39 }
  0x77   : > { %v2317_v26 = vpop.permute.xlu2 %631 }
  0x88   : > { %v2199_v54 = vpop.permute.xlu0 %479 }
  0x91   : > { %v416_v44 = vpop.f32.mrf.mxu0 }
  0x92   : > { %v443_v45 = vpack.c.bf16 %v416_v44, %v416_v44  ;;  %v434_v46 = vpop.f32.mrf.mxu1  ;;  %v1950_v44 = vld [vmem:[%s2154_s30 + $0x74] sm:$0xf0] }
  0x93   : > { %v444_v48 = vpack.c.bf16 %v434_v46, %v434_v46  ;;  %v1867_v46 = vld [vmem:[%s2154_s30 + $0x60] sm:$0xf] }
  0x94   : > { %586 = vmatmul.bf16.vlgmr.msra.gmra.mxu2 %v443_v45  ;;  %v1876_v45 = vor.u32 %v1950_v44, %v1875_v43  ;;  %v1961_v43 = vld [vmem:[%s2514_s2 + $0x28] sm:$0xff] }
  0x95   : > { %599 = vmatmul.bf16.vlgmr.msra.gmra.mxu3 %v444_v48 }
  0x96   : > { %1010 = vmatpush.bf16.msra.mxu3 %v1750_v47  ;;  %v1948_v47 = vld [vmem:[%s2154_s30 + $0x64] sm:$0xf0] }
  0x97   : > { %v1868_v48 = vor.u32 %v1948_v47, %v1867_v46 }
  0xa5   : > { %1725 = vmatmul.msk.bf16.vlgmr.msrb.gmra.mxu3 %vm892_vm1, %v2183_v49 }
  0xb5   : > { %1753 = vmatmul.msk.bf16.vlgmr.msra.gmra.mxu3 %vm400_vm0, %v2190_v50 }
 0x117   : > { %v587_v55 = vpop.f32.mrf.mxu2 }
 0x118   : > { %v588_v57 = vadd.f32 %v587_v55, %v2199_v54  ;;  %v600_v58 = vpop.f32.mrf.mxu3  ;;  %v2278_v55 = vpop.f32.mrf.mxu0 }
 0x11a   : > { %v601_v59 = vadd.f32 %v600_v58, %v588_v57  ;;  %v2284_v58 = vpop.permute.xlu0 %616 }
 0x11c   : > { %v604_v60 = vadd.f32 3.0, %v601_v59 }
 0x11e   : > { %v605_v61 = vmax.f32 %v604_v60, 0.0 }
 0x11f   : > { %v589_v62 = vpop.f32.mrf.mxu2 }
 0x120   : > { %v606_v0 = vmin.f32 %v605_v61, 6.0  ;;  %v602_v1 = vpop.f32.mrf.mxu3  ;;  %v2282_v56 = vpop.f32.mrf.mxu0  ;;  %v1671_v61 = vld [vmem:[%s2515_s3 + $0x10] sm:$0xf]  ;;  %v1941_v62 = vld [vmem:[%s2515_s3 + $0x14] sm:$0xf0] }
 0x121   : > { %v1673_v1 = vld [vmem:[%s2515_s3 + $0x18] sm:$0xf0] }
 0x122   : > { %v607_v2 = vmul.f32 0.16666667, %v606_v0  ;;  %v1672_v0 = vor.u32 %v1941_v62, %v1671_v61  ;;  %v1676_v3 = vor.u32 %v1940_v63, %v1673_v1 }
 0x124   : > { %v608_v5 = vmul.f32 %v607_v2, %v601_v59  ;;  %793 = vmatpush.bf16.msrb.mxu1 %v1672_v0  ;;  %812 = vmatpush.bf16.msrb.mxu2 %v1676_v3 }
 0x126   : > { %v613_v6 = vpack.c.bf16 %v608_v5, %v608_v5  ;;  %v1939_v5 = vld [vmem:[%s2515_s3 + $0x4] sm:$0xf0] }
 0x127   : > { %v1664_v8 = vor.u32 %v1939_v5, %v1663_v4 }
 0x128   : > { %v653_v10 = vsel %vm651_vm2, %v613_v6, 0  ;;  %v2239_v27 = vpop.f32.mrf.mxu3  ;;  %v423_v57 = vpop.f32.mrf.mxu0  ;;  %v1938_v6 = vld [vmem:[%s2515_s3 + $0x4] sm:$0xf] }
 0x129   : > { %662 = vmatpush.bf16.msrb.mxu0 %v653_v10  ;;  %v1668_v10 = vor.u32 %v1938_v6, %v1665_v9  ;;  %794 = vmatpush.bf16.msrb.mxu1 %v1664_v8 }
 0x12b   : > { %813 = vmatpush.bf16.msrb.mxu2 %v1668_v10 }
 0x12c   : > { %1655 = vmatmul.msk.bf16.vlgmr.msrb.gmra.mxu0 %vm644_vm3, %v1936_v11 }
 0x12d   : > { %913 = vmatpush.bf16.msra.mxu0 %v1724_v7  ;;  %v2308_v7 = vpop.permute.xlu1 %621 }
 0x130   : > { %v2255_v32 = vpop.f32.mrf.mxu3 }
 0x131   : > { %914 = vmatpush.bf16.msra.mxu0 %v1716_v12 }
 0x135   : > { %915 = vmatpush.bf16.msra.mxu0 %v1708_v15  ;;  %v2314_v16 = vpop.permute.xlu1 %626 }
 0x138   : > { %v1012_v38 = vpop.f32.mrf.mxu3 }
 0x139   : > { %916 = vmatpush.bf16.msra.mxu0 %v1700_v18  ;;  %v1022_v41 = vpack.c.bf16 %v1012_v38, %v1012_v38 }
 0x13c   : > { %1656 = vmatmul.msk.bf16.gmra.mxu0 %vm644_vm3, %v1937_v23  ;;  %v352_v23 = vlaneseq }
 0x13d   : > { %917 = vmatpush.bf16.msra.mxu0 %v1692_v21 }
 0x141   : > { %1164 = vmatpush.bf16.msrb.mxu0 %v1971_v22 }
 0x145   : > { %1165 = vmatpush.bf16.msrb.mxu0 %v1970_v24 }
 0x149   : > { %1166 = vmatpush.bf16.msrb.mxu0 %v1969_v25 }
 0x14c   : > { %1726 = vmatmul.msk.bf16.vlgmr.msra.gmra.mxu0 %vm892_vm1, %v2183_v49  ;;  %v1859_v49 = vld [vmem:[%s2154_s30 + $0x50] sm:$0xf] }
 0x14d   : > { %1167 = vmatpush.bf16.msrb.mxu0 %v1968_v28  ;;  %v1860_v52 = vor.u32 %v1946_v51, %v1859_v49  ;;  %v2337_v51 = vpop.f32.mrf.mxu1 }
 0x151   : > { %1168 = vmatpush.bf16.msrb.mxu0 %v1967_v29  ;;  %v2319_v29 = vand.u32 127, %v352_v23 }
 0x153   : > { %vm358_vm4 = vcmp.lt.s32.totalorder %v2319_v29, 16 }
 0x154   : > { %vm359_vm7 = vmxor %vm2034_vm6, %vm358_vm4 }
 0x155   : > { %1169 = vmatpush.bf16.msrb.mxu0 %v1966_v31  ;;  %vm2340_vm11 = vmxor %vm359_vm7, %vm2034_vm6 }
 0x159   : > { %1170 = vmatpush.bf16.msrb.mxu0 %v1965_v33 }
 0x15d   : > { %1171 = vmatpush.bf16.msrb.mxu0 %v1964_v36 }
 0x160   : > { %1172 = vmatmul.bf16.vlgmr.msrb.gmra.mxu0 %v1022_v41 }
 0x161   : > { %1438 = vmatpush.bf16.msra.mxu0 %v1892_v37 }
 0x165   : > { %1439 = vmatpush.bf16.msra.mxu0 %v1884_v42 }
 0x169   : > { %1440 = vmatpush.bf16.msra.mxu0 %v1876_v45 }
 0x16d   : > { %1441 = vmatpush.bf16.msra.mxu0 %v1868_v48 }
 0x171   : > { %1442 = vmatpush.bf16.msra.mxu0 %v1860_v52 }
 0x174   : > { %1897 = vmatmul.msk.bf16.vlgmr.msra.gmra.mxu0 %vm892_vm1, %v2276_v53 }
 0x1a9   : > { %v664_v59 = vpop.f32.mrf.mxu0 }
 0x1aa   : > { %v665_v60 = vadd.f32 %v664_v59, %v2284_v58  ;;  %v1745_v59 = vld [vmem:[%s2106_s19 + $0x10] sm:$0xf] }
 0x1ac   : > { %v1657_v2 = vmul.f32 -1.442695, %v665_v60  ;;  %v1944_v60 = vld [vmem:[%s2106_s19 + $0x14] sm:$0xf0]  ;;  %s2413_s19 = scalar_lea.vmem %s2520_s8, %s1906_s12 }
 0x1ad   : > { %v1746_v1 = vor.u32 %v1944_v60, %v1745_v59  ;;  %v2401_v59 = vpop.permute.xlu2 %829 }
 0x1ae   : > { %1993 = vpow2.f32 %v1657_v2  ;;  %v906_v60 = vadd.f32 %v2239_v27, %v2401_v59 }
 0x1af   : > { %992 = vmatpush.bf16.msra.mxu1 %v1746_v1 }
 0x1b1   : > { %v666_v11 = vpop.f32.mrf.mxu0 }
 0x1b2   : > { %v667_v12 = vadd.f32 %v666_v11, %v2308_v7 }
 0x1b4   : > { %v1994_v13 = vpop.eup %1993  ;;  %v1658_v14 = vmul.f32 -1.442695, %v667_v12  ;;  %v2355_v12 = vpop.f32.mrf.mxu1 }
 0x1b5   : > { %v686_v15 = vadd.f32 1.0, %v1994_v13 }
 0x1b6   : > { %1995 = vpow2.f32 %v1658_v14 }
 0x1b7   : > { %1997 = vrcp.f32 %v686_v15  ;;  %v701_v39 = vand.u32 2147483648, %v686_v15  ;;  %vm695_vm8 = vweird.f32 %v686_v15  ;;  %v699_v41 = vand.u32 2147483647, %v686_v15 }
 0x1b9   : > { %v669_v17 = vpop.f32.mrf.mxu0  ;;  %v702_v48 = vor.u32 1.1754944e-38, %v701_v39  ;;  %vm700_vm12 = vcmp.eq.f32.partialorder %v699_v41, 8.507059e+37  ;;  %v1962_v41 = vld [vmem:[%s2514_s2 + $0x30] sm:$0xff] }
 0x1ba   : > { %v670_v18 = vadd.f32 %v669_v17, %v2314_v16 }
 0x1bc   : > { %v1996_v19 = vpop.eup %1995  ;;  %v1659_v20 = vmul.f32 -1.442695, %v670_v18 }
 0x1bd   : > { %v1998_v21 = vpop.eup %1997  ;;  %v687_v22 = vadd.f32 1.0, %v1996_v19 }
 0x1be   : > { %v691_v24 = vmul.f32 %v1998_v21, %v686_v15  ;;  %1999 = vpow2.f32 %v1659_v20  ;;  %vm696_vm5 = vweird.f32 %v1998_v21 }
 0x1bf   : > { %2001 = vrcp.f32 %v687_v22  ;;  %vm2331_vm9 = vmor %vm695_vm8, %vm696_vm5  ;;  %v716_v44 = vand.u32 2147483648, %v687_v22  ;;  %v714_v47 = vand.u32 2147483647, %v687_v22  ;;  %vm710_vm13 = vweird.f32 %v687_v22 }
 0x1c0   : > { %v692_v25 = vsub.f32 1.0, %v691_v24  ;;  %vm780_vm5 = vcmask 261120  }
 0x1c1   : > { %v671_v28 = vpop.f32.mrf.mxu0  ;;  %v717_v0 = vor.u32 1.1754944e-38, %v716_v44  ;;  %vm715_vm15 = vcmp.eq.f32.partialorder %v714_v47, 8.507059e+37  ;;  %v1960_v44 = vld [vmem:[%s2514_s2 + $0x20] sm:$0xff] }
 0x1c2   : > { %v672_v30 = vadd.f32 %v671_v28, %v2317_v26  ;;  %v693_v31 = vmul.f32 %v1998_v21, %v692_v25  ;;  %v1956_v47 = vld [vmem:[%s2514_s2] sm:$0xff] }
 0x1c4   : > { %v2000_v33 = vpop.eup %1999  ;;  %v1660_v34 = vmul.f32 -1.442695, %v672_v30  ;;  %v694_v38 = vadd.f32 %v1998_v21, %v693_v31  ;;  %v441_v31 = vpop.f32.mrf.mxu1 }
 0x1c5   : > { %v2002_v35 = vpop.eup %2001  ;;  %v2322_v36 = vadd.f32 1.0, %v2000_v33 }
 0x1c6   : > { %v706_v37 = vmul.f32 %v2002_v35, %v687_v22  ;;  %2003 = vpow2.f32 %v1660_v34  ;;  %v698_v45 = vsel %vm2331_vm9, %v1998_v21, %v694_v38  ;;  %vm711_vm10 = vweird.f32 %v2002_v35 }
 0x1c7   : > { %2005 = vrcp.f32 %v2322_v36  ;;  %v703_v63 = vsel %vm700_vm12, %v702_v48, %v698_v45  ;;  %vm712_vm14 = vmor %vm710_vm13, %vm711_vm10  ;;  %v731_v17 = vand.u32 2147483648, %v2322_v36  ;;  %vm725_vm8 = vweird.f32 %v2322_v36  ;;  %v1958_v45 = vld [vmem:[%s2514_s2 + $0x10] sm:$0xff] }
 0x1c8   : > { %v707_v40 = vsub.f32 1.0, %v706_v37  ;;  %v750_v6 = vsel %vm2340_vm11, %v703_v63, 0.0  ;;  %v729_v19 = vand.u32 2147483647, %v2322_v36  ;;  %vm2365_vm12 = vmxor %vm358_vm4, %vm2034_vm6  ;;  %v924_v63 = vmax.f32 %v906_v60, 0.0 }
 0x1c9   : > { %v2329_v42 = vpop.f32.mrf.mxu0  ;;  %v732_v25 = vor.u32 1.1754944e-38, %v731_v17  ;;  %v960_v60 = vld [vmem:[%s2516_s4 + $0x8] sm:$0xf] }
 0x1ca   : > { %v708_v46 = vmul.f32 %v2002_v35, %v707_v40  ;;  %vm730_vm13 = vcmp.eq.f32.partialorder %v729_v19, 8.507059e+37  ;;  %v1963_v40 = vld [vmem:[%s2514_s2 + $0x38] sm:$0xff]  ;;  %v920_v1 = vadd.f32 %v2329_v42, %v2401_v59 }
 0x1cb   : > { %1151 = vmatpush.bf16.msra.mxu2 %v1963_v40 }
 0x1cc   : > { %v2004_v49 = vpop.eup %2003  ;;  %v709_v57 = vadd.f32 %v2002_v35, %v708_v46  ;;  %v1957_v46 = vld [vmem:[%s2514_s2 + $0x8] sm:$0xff] }
 0x1cd   : > { %v2006_v61 = vpop.eup %2005  ;;  %v689_v62 = vadd.f32 1.0, %v2004_v49 }
 0x1ce   : > { %v721_v2 = vmul.f32 %v2006_v61, %v2322_v36  ;;  %v713_v3 = vsel %vm712_vm14, %v2002_v35, %v709_v57  ;;  %vm726_vm7 = vweird.f32 %v2006_v61 }
 0x1cf   : > { %2007 = vrcp.f32 %v689_v62  ;;  %v718_v4 = vsel %vm715_vm15, %v717_v0, %v713_v3  ;;  %vm727_vm9 = vmor %vm725_vm8, %vm726_vm7  ;;  %v746_v21 = vand.u32 2147483648, %v689_v62  ;;  %v744_v24 = vand.u32 2147483647, %v689_v62  ;;  %1152 = vmatpush.bf16.msra.mxu2 %v1962_v41  ;;  %v2408_v3 = vpop.permute.xlu0 %834  ;;  %v1949_v41 = vld [vmem:[%s2154_s30 + $0x74] sm:$0xf] }
 0x1d0   : > { %v722_v5 = vsub.f32 1.0, %v721_v2  ;;  %v751_v8 = vsel %vm2340_vm11, %v718_v4, 0.0  ;;  %vm740_vm14 = vweird.f32 %v689_v62  ;;  %v908_v27 = vadd.f32 %v2255_v32, %v2408_v3 }
 0x1d1   : > { %v2351_v9 = vpop.f32.mrf.mxu0  ;;  %v754_v10 = vpack.c.bf16 %v751_v8, %v750_v6  ;;  %v747_v34 = vor.u32 1.1754944e-38, %v746_v21  ;;  %vm745_vm7 = vcmp.eq.f32.partialorder %v744_v24, 8.507059e+37  ;;  %v925_v6 = vmax.f32 %v920_v1, 0.0  ;;  %v1843_v1 = vld [vmem:[%s2515_s3 + $0x10] sm:$0xf] }
 0x1d2   : > { %v723_v11 = vmul.f32 %v2006_v61, %v722_v5 }
 0x1d3   : > { %1677 = vmatmul.msk.bf16.vlgmr.msrb.gmra.mxu1 %vm780_vm5, %v754_v10  ;;  %1679 = vmatmul.msk.bf16.vlgmr.msrb.gmra.mxu2 %vm780_vm5, %v754_v10  ;;  %v926_v10 = vmax.f32 %v908_v27, 0.0 }
 0x1d4   : > { %v724_v15 = vadd.f32 %v2006_v61, %v723_v11  ;;  %1153 = vmatpush.bf16.msra.mxu2 %v1961_v43  ;;  %v1877_v43 = vld [vmem:[%s2154_s30 + $0x78] sm:$0xf0] }
 0x1d5   : > { %v2008_v13 = vpop.eup %2007 }
 0x1d6   : > { %v736_v14 = vmul.f32 %v2008_v13, %v689_v62  ;;  %v728_v22 = vsel %vm727_vm9, %v2006_v61, %v724_v15  ;;  %vm741_vm10 = vweird.f32 %v2008_v13 }
 0x1d7   : > { %v733_v33 = vsel %vm730_vm13, %v732_v25, %v728_v22  ;;  %vm742_vm15 = vmor %vm740_vm14, %vm741_vm10 }
 0x1d8   : > { %v737_v18 = vsub.f32 1.0, %v736_v14  ;;  %v752_v37 = vsel %vm2365_vm12, %v733_v33, 0.0  ;;  %1154 = vmatpush.bf16.msra.mxu2 %v1960_v44  ;;  %v922_v14 = vadd.f32 %v2351_v9, %v2408_v3  ;;  %v1880_v44 = vor.u32 %v1949_v41, %v1877_v43 }
 0x1da   : > { %v738_v23 = vmul.f32 %v2008_v13, %v737_v18  ;;  %v927_v18 = vmax.f32 %v922_v14, 0.0 }
 0x1dc   : > { %v739_v30 = vadd.f32 %v2008_v13, %v738_v23 }
 0x1dd   : > { %v2360_v20 = vpop.f32.mrf.mxu0 }
 0x1de   : > { %v743_v35 = vsel %vm742_vm15, %v2008_v13, %v739_v30 }
 0x1df   : > { %v748_v36 = vsel %vm745_vm7, %v747_v34, %v743_v35  ;;  %v1953_v35 = vld [vmem:[%s2154_s30 + $0x94] sm:$0xf] }
 0x1e0   : > { %v753_v29 = vsel %vm2365_vm12, %v748_v36, 0.0  ;;  %v1893_v36 = vld [vmem:[%s2154_s30 + $0x98] sm:$0xf0] }
 0x1e1   : > { %v755_v39 = vpack.c.bf16 %v753_v29, %v752_v37  ;;  %v1896_v29 = vor.u32 %v1953_v35, %v1893_v36 }
 0x1e3   : > { %1678 = vmatmul.msk.bf16.gmra.mxu1 %vm780_vm5, %v755_v39  ;;  %1680 = vmatmul.msk.bf16.gmra.mxu2 %vm780_vm5, %v755_v39  ;;  %v1885_v39 = vld [vmem:[%s2154_s30 + $0x88] sm:$0xf0] }
 0x1e5   : > { %v1175_v38 = vpop.f32.mrf.mxu0 }
 0x1e6   : > { %v1951_v38 = vld [vmem:[%s2154_s30 + $0x84] sm:$0xf] }
 0x1e7   : > { %v1888_v40 = vor.u32 %v1951_v38, %v1885_v39 }
 0x1f3   : > { %1751 = vmatmul.msk.bf16.vlgmr.msra.gmra.mxu1 %vm400_vm0, %v2190_v50  ;;  %v1959_v50 = vld [vmem:[%s2514_s2 + $0x18] sm:$0xff] }
 0x1f4   : > { %1155 = vmatpush.bf16.msra.mxu2 %v1959_v50  ;;  %v1947_v50 = vld [vmem:[%s2154_s30 + $0x64] sm:$0xf] }
 0x1f8   : > { %1156 = vmatpush.bf16.msra.mxu2 %v1958_v45  ;;  %v1869_v45 = vld [vmem:[%s2154_s30 + $0x68] sm:$0xf0] }
 0x1fc   : > { %1157 = vmatpush.bf16.msra.mxu2 %v1957_v46  ;;  %v1872_v46 = vor.u32 %v1947_v50, %v1869_v45 }
 0x200   : > { %1158 = vmatpush.bf16.msra.mxu2 %v1956_v47  ;;  %v1945_v47 = vld [vmem:[%s2154_s30 + $0x54] sm:$0xf] }
 0x250   : > { %v796_v48 = vpop.f32.mrf.mxu1 }
 0x256   : > { %v815_v49 = vpop.f32.mrf.mxu2 }
 0x258   : > { %v798_v57 = vpop.f32.mrf.mxu1 }
 0x25e   : > { %v817_v61 = vpop.f32.mrf.mxu2 }
 0x260   : > { %v801_v62 = vpop.f32.mrf.mxu1 }
 0x261   : > { %v928_v0 = vmul.f32 %v801_v62, %v796_v48  ;;  %v1861_v48 = vld [vmem:[%s2154_s30 + $0x58] sm:$0xf0] }
 0x263   : > { %v932_v2 = vmul.f32 %v928_v0, %v924_v63 }
 0x265   : > { %v936_v4 = vadd.f32 %v932_v2, %v2278_v55  ;;  %v1976_v2 = vld [vmem:[%s2515_s3 + $0x14] sm:$0xf] }
 0x266   : > { %v820_v5 = vpop.f32.mrf.mxu2 }
 0x267   : > { %940 = vst [vmem:[%s2413_s19] sm:$0xff] %v936_v4  ;;  %v929_v42 = vmul.f32 %v820_v5, %v815_v49  ;;  %v1864_v49 = vor.u32 %v1945_v47, %v1861_v48  ;;  %v1845_v4 = vld [vmem:[%s2515_s3 + $0x18] sm:$0xf0] }
 0x268   : > { %v803_v8 = vpop.f32.mrf.mxu1 }
 0x269   : > { %v933_v11 = vmul.f32 %v929_v42, %v925_v6  ;;  %v930_v13 = vmul.f32 %v803_v8, %v798_v57  ;;  %v1973_v57 = vld [vmem:[%s2517_s5 + $0x8] sm:$0xff]  ;;  %v1848_v6 = vor.u32 %v1976_v2, %v1845_v4  ;;  %v1974_v8 = vld [vmem:[%s2515_s3 + $0x4] sm:$0xf] }
 0x26a   : > { %v1975_v42 = vld [vmem:[%s2515_s3 + $0x4] sm:$0xf0] }
 0x26b   : > { %v937_v15 = vadd.f32 %v933_v11, %v2337_v51  ;;  %v934_v17 = vmul.f32 %v930_v13, %v926_v10  ;;  %1362 = vmatpush.bf16.msrb.mxu3 %v1848_v6  ;;  %v1837_v11 = vld [vmem:[%s2515_s3 + $0x8] sm:$0xf0] }
 0x26c   : > { %v1840_v13 = vor.u32 %v1974_v8, %v1837_v11 }
 0x26d   : > { %941 = vst [vmem:[%s2413_s19 + $0x8] sm:$0xff] %v937_v15  ;;  %v938_v32 = vadd.f32 %v934_v17, %v2282_v56 }
 0x26e   : > { %v822_v55 = vpop.f32.mrf.mxu2 }
 0x26f   : > { %942 = vst [vmem:[%s2413_s19 + $0x10] sm:$0xff] %v938_v32  ;;  %v931_v19 = vmul.f32 %v822_v55, %v817_v61  ;;  %v966_v61 = vunpack.c.l.b16 %v960_v60  ;;  %1363 = vmatpush.bf16.msrb.mxu3 %v1840_v13 }
 0x270   : > { %v994_v21 = vpop.f32.mrf.mxu1 }
 0x271   : > { %v935_v22 = vmul.f32 %v931_v19, %v927_v18  ;;  %v1021_v23 = vpack.c.bf16 %v994_v21, %v994_v21  ;;  %v968_v62 = vpack.c.b16 %v966_v61, %v966_v61 }
 0x273   : > { %v939_v24 = vadd.f32 %v935_v22, %v2355_v12  ;;  %1159 = vmatmul.bf16.vlgmr.msra.gmra.mxu2 %v1021_v23  ;;  %1752 = vmatmul.msk.bf16.gmra.mxu1 %vm400_vm0, %v968_v62 }
 0x274   : > { %1754 = vmatmul.msk.bf16.gmra.mxu3 %vm400_vm0, %v968_v62 }
 0x275   : > { %943 = vst [vmem:[%s2413_s19 + $0x18] sm:$0xff] %v939_v24 }
 0x2f6   : > { %v1160_v51 = vpop.f32.mrf.mxu2 }
 0x2f7   : > { %v1161_v9 = vadd.f32 %v1160_v51, %v2199_v54 }
 0x2f9   : > { %v1174_v56 = vadd.f32 %v2360_v20, %v1161_v9  ;;  %v1972_v20 = vld [vmem:[%s2517_s5] sm:$0xff] }
 0x2fb   : > { %v1177_v25 = vadd.f32 3.0, %v1174_v56 }
 0x2fd   : > { %v1178_v30 = vmax.f32 %v1177_v25, 0.0 }
 0x2fe   : > { %v1162_v31 = vpop.f32.mrf.mxu2 }
 0x2ff   : > { %v1179_v33 = vmin.f32 %v1178_v30, 6.0 }
 0x301   : > { %v1180_v34 = vmul.f32 0.16666667, %v1179_v33 }
 0x303   : > { %v1181_v12 = vmul.f32 %v1180_v34, %v1174_v56 }
 0x305   : > { %v1186_v37 = vpack.c.bf16 %v1181_v12, %v1181_v12 }
 0x307   : > { %v1204_v54 = vsel %vm651_vm2, %v1186_v37, 0 }
 0x308   : > { %1213 = vmatpush.bf16.msrb.mxu2 %v1204_v54 }
 0x30b   : > { %1827 = vmatmul.msk.bf16.vlgmr.msrb.gmra.mxu2 %vm644_vm3, %v1972_v20 }
 0x30c   : > { %1452 = vmatpush.bf16.msra.mxu2 %v1896_v29 }
 0x310   : > { %1453 = vmatpush.bf16.msra.mxu2 %v1888_v40 }
 0x314   : > { %1454 = vmatpush.bf16.msra.mxu2 %v1880_v44 }
 0x318   : > { %1455 = vmatpush.bf16.msra.mxu2 %v1872_v46 }
 0x31b   : > { %1828 = vmatmul.msk.bf16.gmra.mxu2 %vm644_vm3, %v1973_v57 }
 0x31c   : > { %1456 = vmatpush.bf16.msra.mxu2 %v1864_v49 }
 0x32b   : > { %1898 = vmatmul.msk.bf16.vlgmr.msra.gmra.mxu2 %vm892_vm1, %v2276_v53  ;;  %v1977_v53 = vld [vmem:[%s2515_s3 + $0x14] sm:$0xf0] }
 0x32c   : > { %v1844_v27 = vor.u32 %v1977_v53, %v1843_v1 }
 0x32e   : > { %1343 = vmatpush.bf16.msrb.mxu1 %v1844_v27 }
 0x38e   : > { %v1215_v63 = vpop.f32.mrf.mxu2 }
 0x38f   : > { %v1216_v0 = vadd.f32 %v1215_v63, %v2284_v58  ;;  %v1835_v58 = vld [vmem:[%s2515_s3] sm:$0xf] }
 0x390   : > { %v1836_v10 = vor.u32 %v1975_v42, %v1835_v58 }
 0x391   : > { %v1829_v5 = vmul.f32 -1.442695, %v1216_v0 }
 0x392   : > { %1344 = vmatpush.bf16.msrb.mxu1 %v1836_v10 }
 0x393   : > { %2009 = vpow2.f32 %v1829_v5 }
 0x396   : > { %v1217_v14 = vpop.f32.mrf.mxu2 }
 0x397   : > { %v1218_v15 = vadd.f32 %v1217_v14, %v2308_v7 }
 0x399   : > { %v2010_v17 = vpop.eup %2009  ;;  %v1830_v32 = vmul.f32 -1.442695, %v1218_v15 }
 0x39a   : > { %v1237_v55 = vadd.f32 1.0, %v2010_v17 }
 0x39b   : > { %2011 = vpow2.f32 %v1830_v32  ;;  %v996_v32 = vpop.f32.mrf.mxu1 }
 0x39c   : > { %2013 = vrcp.f32 %v1237_v55  ;;  %vm1246_vm1 = vweird.f32 %v1237_v55  ;;  %v1250_v12 = vand.u32 2147483647, %v1237_v55 }
 0x39e   : > { %v1220_v18 = vpop.f32.mrf.mxu2  ;;  %vm1251_vm6 = vcmp.eq.f32.partialorder %v1250_v12, 8.507059e+37 }
 0x39f   : > { %v1221_v19 = vadd.f32 %v1220_v18, %v2314_v16  ;;  %v1252_v16 = vand.u32 2147483648, %v1237_v55 }
 0x3a1   : > { %v2012_v21 = vpop.eup %2011  ;;  %v1831_v22 = vmul.f32 -1.442695, %v1221_v19  ;;  %v1253_v20 = vor.u32 1.1754944e-38, %v1252_v16 }
 0x3a2   : > { %v2014_v23 = vpop.eup %2013  ;;  %v1238_v24 = vadd.f32 1.0, %v2012_v21 }
 0x3a3   : > { %v1242_v51 = vmul.f32 %v2014_v23, %v1237_v55  ;;  %2015 = vpow2.f32 %v1831_v22  ;;  %vm1247_vm0 = vweird.f32 %v2014_v23  ;;  %v1014_v55 = vpop.f32.mrf.mxu3  ;;  %v999_v18 = vpop.f32.mrf.mxu1 }
 0x3a4   : > { %2017 = vrcp.f32 %v1238_v24  ;;  %vm2483_vm2 = vmor %vm1246_vm1, %vm1247_vm0  ;;  %v1267_v38 = vand.u32 2147483648, %v1238_v24  ;;  %vm1261_vm4 = vweird.f32 %v1238_v24 }
 0x3a5   : > { %v1243_v9 = vsub.f32 1.0, %v1242_v51  ;;  %v1444_v51 = vpop.f32.mrf.mxu0 }
 0x3a6   : > { %v1222_v56 = vpop.f32.mrf.mxu2  ;;  %v1268_v44 = vor.u32 1.1754944e-38, %v1267_v38 }
 0x3a7   : > { %v1244_v25 = vmul.f32 %v2014_v23, %v1243_v9  ;;  %v1223_v7 = vadd.f32 %v1222_v56, %v2317_v26  ;;  %v1265_v26 = vand.u32 2147483647, %v1238_v24  ;;  %v1445_v56 = vadd.f32 %v1444_v51, %v2401_v59 }
 0x3a9   : > { %v2016_v30 = vpop.eup %2015  ;;  %v1832_v31 = vmul.f32 -1.442695, %v1223_v7  ;;  %v1245_v35 = vadd.f32 %v2014_v23, %v1244_v25  ;;  %vm1266_vm9 = vcmp.eq.f32.partialorder %v1265_v26, 8.507059e+37 }
 0x3aa   : > { %v2018_v33 = vpop.eup %2017  ;;  %v1239_v34 = vadd.f32 1.0, %v2016_v30  ;;  %v1463_v30 = vmax.f32 %v1445_v56, 0.0 }
 0x3ab   : > { %v1257_v36 = vmul.f32 %v2018_v33, %v1238_v24  ;;  %2019 = vpow2.f32 %v1832_v31  ;;  %vm1262_vm3 = vweird.f32 %v2018_v33  ;;  %v1249_v54 = vsel %vm2483_vm2, %v2014_v23, %v1245_v35  ;;  %v1017_v19 = vpop.f32.mrf.mxu3  ;;  %v1001_v21 = vpop.f32.mrf.mxu1 }
 0x3ac   : > { %2021 = vrcp.f32 %v1239_v34  ;;  %vm1263_vm8 = vmor %vm1261_vm4, %vm1262_vm3  ;;  %v1254_v45 = vsel %vm1251_vm6, %v1253_v20, %v1249_v54  ;;  %v1282_v53 = vand.u32 2147483648, %v1239_v34  ;;  %vm1276_vm13 = vweird.f32 %v1239_v34 }
 0x3ad   : > { %v1258_v37 = vsub.f32 1.0, %v1257_v36  ;;  %v1301_v57 = vsel %vm2340_vm11, %v1254_v45, 0.0  ;;  %v1280_v27 = vand.u32 2147483647, %v1239_v34 }
 0x3ae   : > { %v1283_v58 = vor.u32 1.1754944e-38, %v1282_v53  ;;  %v1458_v28 = vpop.f32.mrf.mxu2 }
 0x3af   : > { %v1259_v39 = vmul.f32 %v2018_v33, %v1258_v37 }
 0x3b1   : > { %v2020_v40 = vpop.eup %2019  ;;  %v1260_v41 = vadd.f32 %v2018_v33, %v1259_v39 }
 0x3b2   : > { %v2022_v43 = vpop.eup %2021  ;;  %v1240_v50 = vadd.f32 1.0, %v2020_v40 }
 0x3b3   : > { %v1272_v46 = vmul.f32 %v2022_v43, %v1239_v34  ;;  %v1264_v47 = vsel %vm1263_vm8, %v2018_v33, %v1260_v41  ;;  %vm1277_vm10 = vweird.f32 %v2022_v43  ;;  %v1019_v22 = vpop.f32.mrf.mxu3  ;;  %v1446_v33 = vpop.f32.mrf.mxu0  ;;  %v1459_v34 = vadd.f32 %v1458_v28, %v2401_v59 }
 0x3b4   : > { %2023 = vrcp.f32 %v1240_v50  ;;  %v1269_v48 = vsel %vm1266_vm9, %v1268_v44, %v1264_v47  ;;  %vm1278_vm14 = vmor %vm1276_vm13, %vm1277_vm10  ;;  %v1297_v4 = vand.u32 2147483648, %v1240_v50  ;;  %v1295_v52 = vand.u32 2147483647, %v1240_v50 }
 0x3b5   : > { %v1273_v49 = vsub.f32 1.0, %v1272_v46  ;;  %v1302_v60 = vsel %vm2340_vm11, %v1269_v48, 0.0  ;;  %vm1281_vm11 = vcmp.eq.f32.partialorder %v1280_v27, 8.507059e+37  ;;  %vm1291_vm7 = vweird.f32 %v1240_v50 }
 0x3b6   : > { %v1305_v61 = vpack.c.bf16 %v1302_v60, %v1301_v57  ;;  %v1298_v10 = vor.u32 1.1754944e-38, %v1297_v4  ;;  %vm1296_vm1 = vcmp.eq.f32.partialorder %v1295_v52, 8.507059e+37  ;;  %v1447_v36 = vadd.f32 %v1446_v33, %v2408_v3  ;;  %v1460_v38 = vpop.f32.mrf.mxu2 }
 0x3b7   : > { %v1274_v62 = vmul.f32 %v2022_v43, %v1273_v49  ;;  %v1464_v37 = vmax.f32 %v1459_v34, 0.0  ;;  %v1461_v40 = vadd.f32 %v1460_v38, %v2408_v3 }
 0x3b8   : > { %1849 = vmatmul.msk.bf16.vlgmr.msrb.gmra.mxu1 %vm780_vm5, %v1305_v61  ;;  %1851 = vmatmul.msk.bf16.vlgmr.msrb.gmra.mxu3 %vm780_vm5, %v1305_v61  ;;  %v1465_v26 = vmax.f32 %v1447_v36, 0.0 }
 0x3b9   : > { %v1275_v1 = vadd.f32 %v2022_v43, %v1274_v62 }
 0x3ba   : > { %v2024_v63 = vpop.eup %2023 }
 0x3bb   : > { %v1287_v0 = vmul.f32 %v2024_v63, %v1240_v50  ;;  %v1279_v5 = vsel %vm1278_vm14, %v2022_v43, %v1275_v1  ;;  %vm1292_vm15 = vweird.f32 %v2024_v63  ;;  %v1466_v50 = vmax.f32 %v1461_v40, 0.0 }
 0x3bc   : > { %v1284_v8 = vsel %vm1281_vm11, %v1283_v58, %v1279_v5  ;;  %vm1293_vm0 = vmor %vm1291_vm7, %vm1292_vm15 }
 0x3bd   : > { %v1288_v2 = vsub.f32 1.0, %v1287_v0  ;;  %v1303_v14 = vsel %vm2365_vm12, %v1284_v8, 0.0 }
 0x3bf   : > { %v1289_v6 = vmul.f32 %v2024_v63, %v1288_v2 }
 0x3c1   : > { %v1290_v42 = vadd.f32 %v2024_v63, %v1289_v6 }
 0x3c3   : > { %v1294_v11 = vsel %vm1293_vm0, %v2024_v63, %v1290_v42 }
 0x3c4   : > { %v1299_v13 = vsel %vm1296_vm1, %v1298_v10, %v1294_v11 }
 0x3c5   : > { %v1304_v15 = vsel %vm2365_vm12, %v1299_v13, 0.0 }
 0x3c6   : > { %v1306_v17 = vpack.c.bf16 %v1304_v15, %v1303_v14 }
 0x3c8   : > { %1850 = vmatmul.msk.bf16.gmra.mxu1 %vm780_vm5, %v1306_v17  ;;  %1852 = vmatmul.msk.bf16.gmra.mxu3 %vm780_vm5, %v1306_v17 }
 0x435   : > { %v1346_v23 = vpop.f32.mrf.mxu1 }
 0x43b   : > { %v1365_v24 = vpop.f32.mrf.mxu3 }
 0x43d   : > { %v1348_v9 = vpop.f32.mrf.mxu1 }
 0x443   : > { %v1367_v25 = vpop.f32.mrf.mxu3 }
 0x445   : > { %v1351_v7 = vpop.f32.mrf.mxu1 }
 0x446   : > { %v1467_v31 = vmul.f32 %v1351_v7, %v1346_v23 }
 0x448   : > { %v1471_v35 = vmul.f32 %v1467_v31, %v1463_v30 }
 0x44a   : > { %v1475_v16 = vadd.f32 %v1471_v35, %v996_v32 }
 0x44b   : > { %v1370_v12 = vpop.f32.mrf.mxu3 }
 0x44c   : > { %1899 = vst [vmem:[%s2413_s19 + $0x20] sm:$0xff] %v1475_v16  ;;  %v1468_v29 = vmul.f32 %v1370_v12, %v1365_v24 }
 0x44d   : > { %v1353_v39 = vpop.f32.mrf.mxu1 }
 0x44e   : > { %v1472_v54 = vmul.f32 %v1468_v29, %v1464_v37  ;;  %v1469_v20 = vmul.f32 %v1353_v39, %v1348_v9 }
 0x450   : > { %v1476_v41 = vadd.f32 %v1472_v54, %v1014_v55  ;;  %v1473_v59 = vmul.f32 %v1469_v20, %v1465_v26 }
 0x452   : > { %1900 = vst [vmem:[%s2413_s19 + $0x28] sm:$0xff] %v1476_v41  ;;  %v1477_v43 = vadd.f32 %v1473_v59, %v999_v18 }
 0x453   : > { %v1372_v44 = vpop.f32.mrf.mxu3 }
 0x454   : > { %1901 = vst [vmem:[%s2413_s19 + $0x30] sm:$0xff] %v1477_v43  ;;  %v1470_v45 = vmul.f32 %v1372_v44, %v1367_v25 }
 0x456   : > { %v1474_v46 = vmul.f32 %v1470_v45, %v1466_v50 }
 0x458   : > { %v1478_v47 = vadd.f32 %v1474_v46, %v1017_v19 }
 0x45a   : > { %1902 = vst [vmem:[%s2413_s19 + $0x38] sm:$0xff] %v1478_v47 }
 0x45b PF: > { %s18_s27 = sadd.s32 1, %s2031_s27  }
 0x45c   : > { %p15_p4 = scmp.ge.s32.totalorder %s18_s27, 4  }
 0x45e   :  { %17 = sbr.rel (!%p15_p4) target bundleno = 1 (0x1), region = 88 }

</bundles_post_ra>
